<compile_context>
chip_gen: v7x
topology: tpu7x:2x2x1
jax: 0.10.0
libtpu: 0.0.40
codegen_flags: <defaults>
</compile_context>

<pallas_src>
import functools
import math

import jax
import jax.numpy as jnp
from jax import lax
from jax.experimental import pallas as pl
from jax.experimental.pallas import tpu as pltpu


# ----------------------------------------------------------------------------
# Glue: Perlin noise generation (plain JAX, equivalent of generate_perlin_noise)
# ----------------------------------------------------------------------------
def next_power_2(num: int) -> int:
    return 1 << (num - 1).bit_length()


def generate_perlin_noise(key, height: int, width: int, res=(4, 4)):
    """2D Perlin noise on a (height, width) grid (height/width powers of 2)."""
    d_h = height // res[0]
    d_w = width // res[1]
    gy = (jnp.arange(height, dtype=jnp.float32) / d_h) % 1.0
    gx = (jnp.arange(width, dtype=jnp.float32) / d_w) % 1.0
    grid_y, grid_x = jnp.meshgrid(gy, gx, indexing="ij")  # (H, W)

    angles = 2.0 * jnp.pi * jax.random.uniform(
        key, (res[0] + 1, res[1] + 1), dtype=jnp.float32)
    grad_y = jnp.sin(angles)
    grad_x = jnp.cos(angles)

    def tile(g, y0, y1, x0, x1):
        sub = g[y0:y1, x0:x1]
        return jnp.repeat(jnp.repeat(sub, d_h, axis=0), d_w, axis=1)

    def dot(gy_t, gx_t, sy, sx):
        return (grid_y + sy) * gy_t + (grid_x + sx) * gx_t

    n00 = dot(tile(grad_y, 0, res[0], 0, res[1]),
              tile(grad_x, 0, res[0], 0, res[1]), 0.0, 0.0)
    n10 = dot(tile(grad_y, 1, res[0] + 1, 0, res[1]),
              tile(grad_x, 1, res[0] + 1, 0, res[1]), -1.0, 0.0)
    n01 = dot(tile(grad_y, 0, res[0], 1, res[1] + 1),
              tile(grad_x, 0, res[0], 1, res[1] + 1), 0.0, -1.0)
    n11 = dot(tile(grad_y, 1, res[0] + 1, 1, res[1] + 1),
              tile(grad_x, 1, res[0] + 1, 1, res[1] + 1), -1.0, -1.0)

    def fade(t):
        return 6.0 * t**5 - 15.0 * t**4 + 10.0 * t**3

    ty = fade(grid_y)
    tx = fade(grid_x)
    lerp = lambda a, b, w_: a + w_ * (b - a)
    return math.sqrt(2.0) * lerp(lerp(n00, n10, ty), lerp(n01, n11, ty), tx)


# ----------------------------------------------------------------------------
# Portable in-kernel Gaussian noise: counter-based hash + Box-Muller.
# (No pltpu.prng_* — those have no interpret-mode lowering.  Plain 32-bit VPU
#  integer ops + EUP transcendentals, same code path on TPU and interpreter.)
# ----------------------------------------------------------------------------
def _hash_u32(x):
    x = (x ^ (x >> 16)) * jnp.uint32(0x7FEB352D)
    x = (x ^ (x >> 15)) * jnp.uint32(0x846CA68B)
    return x ^ (x >> 16)


def _uniform01(counter_u32, seed_u32, salt: int):
    bits = _hash_u32(counter_u32 * jnp.uint32(2) + jnp.uint32(salt)
                     + seed_u32 * jnp.uint32(0x9E3779B9))
    hi = (bits >> 8).astype(jnp.int32).astype(jnp.float32)   # top 24 bits
    return hi * jnp.float32(1.0 / (1 << 24))                 # [0, 1)


def _std_normal(ct: int, hw: int, j, seed_i32, paired: bool):
    """Standard-normal block of shape (1, ct, hw) from a per-sample seed."""
    seed_u = seed_i32.astype(jnp.uint32)
    two_pi = jnp.float32(2.0 * math.pi)
    if paired:
        # Box-Muller producing both outputs -> half the log/sqrt per element.
        half = (1, ct // 2, hw)
        c_idx = lax.broadcasted_iota(jnp.int32, half, 1)
        l_idx = lax.broadcasted_iota(jnp.int32, half, 2)
        ctr = ((j * (ct // 2) + c_idx) * hw + l_idx).astype(jnp.uint32)
        u1 = 1.0 - _uniform01(ctr, seed_u, 0)          # (0, 1]
        u2 = _uniform01(ctr, seed_u, 1)                # [0, 1)
        r = jnp.sqrt(-2.0 * jnp.log(u1))
        th = two_pi * u2
        return jnp.concatenate([r * jnp.cos(th), r * jnp.sin(th)], axis=1)
    shape = (1, ct, hw)
    c_idx = lax.broadcasted_iota(jnp.int32, shape, 1)
    l_idx = lax.broadcasted_iota(jnp.int32, shape, 2)
    ctr = ((j * ct + c_idx) * hw + l_idx).astype(jnp.uint32)
    u1 = 1.0 - _uniform01(ctr, seed_u, 0)
    u2 = _uniform01(ctr, seed_u, 1)
    return jnp.sqrt(-2.0 * jnp.log(u1)) * jnp.cos(two_pi * u2)


# ----------------------------------------------------------------------------
# Pallas kernel: feature perturbation, grid = (B, C-tiles, 2-dup)
# ----------------------------------------------------------------------------
def _anomaly_kernel(b, ct, hw, noise_mean, noise_std, paired,
                    seed_ref,   # SMEM prefetch (2B,) int32  per-sample seed
                    act_ref,    # SMEM prefetch (2B,) int32  1 = sample has anomaly
                    feat_ref,   # VMEM (1, ct, hw)  original features (index i)
                    nmask_ref,  # VMEM (1, 1, hw)   noise mask (index d*b+i)
                    pert_ref):  # VMEM (1, ct, hw)  out: perturbed features
    i = pl.program_id(0)        # original-batch index
    j = pl.program_id(1)        # channel-block index
    d = pl.program_id(2)        # duplicate index (innermost -> feat reused)
    sample = d * b + i

    @pl.when(act_ref[sample] == 0)
    def _copy():
        # No anomalous pixel in this sample: pure copy, no PRNG / EUP work.
        pert_ref[...] = feat_ref[...]

    @pl.when(act_ref[sample] != 0)
    def _inject():
        z = _std_normal(ct, hw, j, seed_ref[sample], paired)
        noise = jnp.float32(noise_mean) + jnp.float32(noise_std) * z
        x = feat_ref[...].astype(jnp.float32)
        nm = nmask_ref[...]                              # (1, 1, hw), 0/1 f32
        pert_ref[...] = (x + noise * nm).astype(pert_ref.dtype)


# ----------------------------------------------------------------------------
# Generation-aware tiling
# ----------------------------------------------------------------------------
def _vmem_budget_and_limit():
    try:
        cap = int(pltpu.get_tpu_info().vmem_capacity_bytes)
    except Exception:          # not on a TPU (e.g. interpret mode)
        cap = 64 << 20
    budget = min(cap // 2, 48 << 20)           # per-tile working-set budget
    limit = min(cap - (8 << 20), budget + (16 << 20))
    return budget, int(limit)


def _pick_channel_tile(c: int, hw: int, feat_bytes: int, budget: int) -> int:
    # double-buffered feature-in + pert-out blocks, plus ~4 f32 temporaries
    # (Box-Muller u1/u2/z + noise) per channel row.
    per_ch = hw * (4 * feat_bytes + 4 * 4)
    ct = max(1, budget // per_ch)
    if ct >= c:
        return c
    return min(c, max(16, (ct // 16) * 16))    # 16-aligned (bf16 sublane packing)


class AnomalyGenerator:
    """JAX/Pallas port of anomalib's SuperSimpleNet AnomalyGenerator."""

    def __init__(self, noise_mean: float, noise_std: float, threshold: float):
        self.noise_mean = noise_mean
        self.noise_std = noise_std
        self.threshold = threshold

    def __call__(self, features, mask, labels, key):
        b, c, h, w = features.shape
        b2 = 2 * b
        hw = h * w
        feat_dtype = features.dtype

        # lane-dense layout: flatten spatial dims, pad to a multiple of 128
        hw_pad = ((hw + 127) // 128) * 128
        feat = features.reshape(b, c, hw)                 # keep native dtype
        mask_f = mask.astype(jnp.float32).reshape(b, 1, hw)

        k_seed, k_perlin, k_keep = jax.random.split(key, 3)

        # --- glue: raw perlin noise per duplicated sample (vmapped) ---------
        ph, pw = next_power_2(h), next_power_2(w)
        pkeys = jax.random.split(k_perlin, b2)
        perlin = jax.vmap(lambda kk: generate_perlin_noise(kk, ph, pw))(pkeys)
        if (ph, pw) != (h, w):
            # TODO(synk): jax.image.resize bilinear differs slightly from torch
            # F.interpolate(align_corners=False); acceptable for noise masks.
            perlin = jax.image.resize(perlin, (b2, h, w), method="bilinear")
        perlin = perlin.reshape(b2, 1, hw)

        # torch: `if torch.rand(1) > 0.5: zero the mask`  ->  keep with p=0.5
        keep = (jax.random.uniform(k_keep, (b2,)) <= 0.5).astype(jnp.float32)
        perlin_bin = (perlin > self.threshold).astype(jnp.float32)
        perlin_bin = perlin_bin * keep[:, None, None]

        # --- mask / label updates on tiny (2B,1,HW) arrays in plain JAX -----
        mask_dup = jnp.concatenate([mask_f, mask_f], axis=0)        # (2B,1,HW)
        noise_mask = (1.0 - mask_dup) * perlin_bin                  # (2B,1,HW)
        mask_out = ((mask_dup + noise_mask) > 0.0).astype(mask.dtype)
        new_anom = noise_mask.reshape(b2, -1).max(axis=1) > 0.0
        labels_dup = jnp.concatenate([labels, labels], axis=0).astype(jnp.float32)
        labels_out = ((labels_dup + new_anom.astype(jnp.float32)) > 0.0
                      ).astype(jnp.float32)

        # per-sample skip flag + RNG seed for the heavy feature kernel
        active = new_anom.astype(jnp.int32)
        seeds = jax.random.randint(k_seed, (b2,), 0,
                                   jnp.iinfo(jnp.int32).max, dtype=jnp.int32)

        if hw_pad != hw:
            feat = jnp.pad(feat, ((0, 0), (0, 0), (0, hw_pad - hw)))
            nmask_k = jnp.pad(noise_mask, ((0, 0), (0, 0), (0, hw_pad - hw)))
        else:
            nmask_k = noise_mask

        feat_bytes = jnp.dtype(feat_dtype).itemsize
        budget, vmem_limit = _vmem_budget_and_limit()
        ct = _pick_channel_tile(c, hw_pad, feat_bytes, budget)
        n_cb = pl.cdiv(c, ct)
        paired = (ct % 16 == 0)      # paired Box-Muller needs 8-aligned halves

        kernel = functools.partial(
            _anomaly_kernel, b, ct, hw_pad, self.noise_mean, self.noise_std,
            paired)

        pert = pl.pallas_call(
            kernel,
            out_shape=jax.ShapeDtypeStruct((b2, c, hw_pad), feat_dtype),
            grid_spec=pltpu.PrefetchScalarGridSpec(
                num_scalar_prefetch=2,            # seeds, active
                grid=(b, n_cb, 2),                # duplicate axis innermost
                in_specs=[
                    # un-duplicated features: index_map ignores d, so each
                    # tile is DMA'd from HBM once and reused for both copies
                    pl.BlockSpec((1, ct, hw_pad),
                                 lambda i, j, d, seeds, act: (i, j, 0)),
                    # per-duplicated-sample noise mask (tiny)
                    pl.BlockSpec((1, 1, hw_pad),
                                 lambda i, j, d, seeds, act: (d * b + i, 0, 0)),
                ],
                out_specs=pl.BlockSpec(
                    (1, ct, hw_pad),
                    lambda i, j, d, seeds, act: (d * b + i, j, 0)),
            ),
            compiler_params=pltpu.CompilerParams(
                dimension_semantics=("parallel", "arbitrary", "arbitrary"),
                vmem_limit_bytes=vmem_limit,
            ),
        )(seeds, active, feat, nmask_k)

        if hw_pad != hw:
            pert = pert[..., :hw]

        return (pert.reshape(b2, c, h, w),
                mask_out.reshape(b2, 1, h, w),
                labels_out)


if __name__ == "__main__":
    key = jax.random.PRNGKey(0)
    b, c, h, w = 2, 4, 16, 16
    kf, km, kg = jax.random.split(key, 3)

    features = jax.random.normal(kf, (b, c, h, w), dtype=jnp.float32)
    # synthetic GT masks / labels
    mask = (jax.random.uniform(km, (b, 1, h, w)) > 0.9).astype(jnp.float32)
    labels = (mask.reshape(b, -1).max(axis=1) > 0).astype(jnp.float32)

    gen = AnomalyGenerator(noise_mean=0.0, noise_std=0.015, threshold=0.2)
    pert, mask_out, labels_out = gen(features, mask, labels, kg)
    pert, mask_out, labels_out = jax.block_until_ready(
        (pert, mask_out, labels_out))

    assert pert.shape == (2 * b, c, h, w) and pert.dtype == jnp.float32
    assert mask_out.shape == (2 * b, 1, h, w) and mask_out.dtype == jnp.float32
    assert labels_out.shape == (2 * b,) and labels_out.dtype == jnp.float32
    # masks/labels must be binary
    assert bool(jnp.all((mask_out == 0) | (mask_out == 1)))
    assert bool(jnp.all((labels_out == 0) | (labels_out == 1)))
    # where the mask did not change, features must be untouched
    unchanged = (mask_out == jnp.concatenate([mask, mask], axis=0))
    feat_dup = jnp.concatenate([features, features], axis=0)
    diff = jnp.where(unchanged, jnp.abs(pert - feat_dup), 0.0)
    assert bool(jnp.all(diff < 1e-6))

    print("KERNEL_OK")
</pallas_src>

<mosaic_0001>
module attributes {stable_mosaic.version = 11 : i64} {
  func.func @_anomaly_kernel(%arg0: i32, %arg1: i32, %arg2: i32, %arg3: memref<4xi32, #tpu.memory_space<smem>>, %arg4: memref<4xi32, #tpu.memory_space<smem>>, %arg5: memref<1x4x256xf32, #tpu.memory_space<vmem>>, %arg6: memref<1x1x256xf32, #tpu.memory_space<vmem>>, %arg7: memref<1x4x256xf32, #tpu.memory_space<vmem>>) attributes {dimension_semantics = [#tpu.dimension_semantics<parallel>, #tpu.dimension_semantics<arbitrary>, #tpu.dimension_semantics<arbitrary>], iteration_bounds = array<i64: 2, 1, 2>, scalar_prefetch = 2 : i64, scratch_operands = 0 : i64, tpu.core_type = #tpu.core_type<tc>, window_params = [{transform_indices = @transform_0, window_bounds = array<i64: 1, 4, 256>}, {transform_indices = @transform_1, window_bounds = array<i64: 1, 1, 256>}, {transform_indices = @transform_2, window_bounds = array<i64: 1, 4, 256>}]} {
    %c2_i32 = arith.constant 2 : i32
    %0 = arith.muli %arg2, %c2_i32 : i32
    %1 = arith.addi %0, %arg0 : i32
    %2 = arith.index_cast %1 : i32 to index
    %3 = memref.load %arg4[%2] : memref<4xi32, #tpu.memory_space<smem>>
    %c0_i32 = arith.constant 0 : i32
    %4 = arith.cmpi eq, %3, %c0_i32 : i32
    %5 = arith.extui %4 : i1 to i32
    %c0_i32_0 = arith.constant 0 : i32
    %6 = arith.cmpi ne, %5, %c0_i32_0 : i32
    scf.if %6 {
      %c0 = arith.constant 0 : index
      %c0_3 = arith.constant 0 : index
      %c0_4 = arith.constant 0 : index
      %12 = vector.load %arg5[%c0, %c0_3, %c0_4] : memref<1x4x256xf32, #tpu.memory_space<vmem>>, vector<1x4x256xf32>
      %c0_5 = arith.constant 0 : index
      %c0_6 = arith.constant 0 : index
      %c0_7 = arith.constant 0 : index
      %13 = vector.load %arg7[%c0_5, %c0_6, %c0_7] : memref<1x4x256xf32, #tpu.memory_space<vmem>>, vector<1x4x256xf32>
      tpu.vector_store %arg7[%c0_5, %c0_6, %c0_7], %12 {strides = array<i32>} : memref<1x4x256xf32, #tpu.memory_space<vmem>>, vector<1x4x256xf32>,
    } else {
    }
    %7 = arith.index_cast %1 : i32 to index
    %8 = memref.load %arg4[%7] : memref<4xi32, #tpu.memory_space<smem>>
    %c0_i32_1 = arith.constant 0 : i32
    %9 = arith.cmpi ne, %8, %c0_i32_1 : i32
    %10 = arith.extui %9 : i1 to i32
    %c0_i32_2 = arith.constant 0 : i32
    %11 = arith.cmpi ne, %10, %c0_i32_2 : i32
    scf.if %11 {
      %12 = arith.index_cast %1 : i32 to index
      %13 = memref.load %arg3[%12] : memref<4xi32, #tpu.memory_space<smem>>
      %14 = tpu.iota {dimensions = array<i32: 1>} : vector<1x4x256xi32>
      %15 = tpu.iota {dimensions = array<i32: 2>} : vector<1x4x256xi32>
      %c4_i32 = arith.constant 4 : i32
      %16 = arith.muli %arg1, %c4_i32 : i32
      %17 = vector.broadcast %16 : i32 to vector<1x4x256xi32>
      %18 = arith.addi %17, %14 : vector<1x4x256xi32>
      %c256_i32 = arith.constant 256 : i32
      %19 = vector.broadcast %c256_i32 : i32 to vector<1x4x256xi32>
      %20 = arith.muli %18, %19 : vector<1x4x256xi32>
      %21 = arith.addi %20, %15 : vector<1x4x256xi32>
      %c2_i32_3 = arith.constant 2 : i32
      %22 = vector.broadcast %c2_i32_3 : i32 to vector<1x4x256xi32>
      %23 = arith.muli %21, %22 : vector<1x4x256xi32>
      %c0_i32_4 = arith.constant 0 : i32
      %24 = vector.broadcast %c0_i32_4 : i32 to vector<1x4x256xi32>
      %25 = arith.addi %23, %24 : vector<1x4x256xi32>
      %c-1640531527_i32 = arith.constant -1640531527 : i32
      %26 = arith.muli %13, %c-1640531527_i32 : i32
      %27 = vector.broadcast %26 : i32 to vector<1x4x256xi32>
      %28 = arith.addi %25, %27 : vector<1x4x256xi32>
      %c16_i32 = arith.constant 16 : i32
      %29 = vector.broadcast %c16_i32 : i32 to vector<1x4x256xi32>
      %30 = arith.shrui %28, %29 : vector<1x4x256xi32>
      %31 = arith.xori %28, %30 : vector<1x4x256xi32>
      %c2146121005_i32 = arith.constant 2146121005 : i32
      %32 = vector.broadcast %c2146121005_i32 : i32 to vector<1x4x256xi32>
      %33 = arith.muli %31, %32 : vector<1x4x256xi32>
      %c15_i32 = arith.constant 15 : i32
      %34 = vector.broadcast %c15_i32 : i32 to vector<1x4x256xi32>
      %35 = arith.shrui %33, %34 : vector<1x4x256xi32>
      %36 = arith.xori %33, %35 : vector<1x4x256xi32>
      %c-2073254261_i32 = arith.constant -2073254261 : i32
      %37 = vector.broadcast %c-2073254261_i32 : i32 to vector<1x4x256xi32>
      %38 = arith.muli %36, %37 : vector<1x4x256xi32>
      %c16_i32_5 = arith.constant 16 : i32
      %39 = vector.broadcast %c16_i32_5 : i32 to vector<1x4x256xi32>
      %40 = arith.shrui %38, %39 : vector<1x4x256xi32>
      %41 = arith.xori %38, %40 : vector<1x4x256xi32>
      %c8_i32 = arith.constant 8 : i32
      %42 = vector.broadcast %c8_i32 : i32 to vector<1x4x256xi32>
      %43 = arith.shrui %41, %42 : vector<1x4x256xi32>
      %44 = arith.sitofp %43 : vector<1x4x256xi32> to vector<1x4x256xf32>
      %cst = arith.constant 5.96046448E-8 : f32
      %45 = vector.broadcast %cst : f32 to vector<1x4x256xf32>
      %46 = arith.mulf %44, %45 : vector<1x4x256xf32>
      %cst_6 = arith.constant 1.000000e+00 : f32
      %47 = vector.broadcast %cst_6 : f32 to vector<1x4x256xf32>
      %48 = arith.subf %47, %46 : vector<1x4x256xf32>
      %c2_i32_7 = arith.constant 2 : i32
      %49 = vector.broadcast %c2_i32_7 : i32 to vector<1x4x256xi32>
      %50 = arith.muli %21, %49 : vector<1x4x256xi32>
      %c1_i32 = arith.constant 1 : i32
      %51 = vector.broadcast %c1_i32 : i32 to vector<1x4x256xi32>
      %52 = arith.addi %50, %51 : vector<1x4x256xi32>
      %c-1640531527_i32_8 = arith.constant -1640531527 : i32
      %53 = arith.muli %13, %c-1640531527_i32_8 : i32
      %54 = vector.broadcast %53 : i32 to vector<1x4x256xi32>
      %55 = arith.addi %52, %54 : vector<1x4x256xi32>
      %c16_i32_9 = arith.constant 16 : i32
      %56 = vector.broadcast %c16_i32_9 : i32 to vector<1x4x256xi32>
      %57 = arith.shrui %55, %56 : vector<1x4x256xi32>
      %58 = arith.xori %55, %57 : vector<1x4x256xi32>
      %c2146121005_i32_10 = arith.constant 2146121005 : i32
      %59 = vector.broadcast %c2146121005_i32_10 : i32 to vector<1x4x256xi32>
      %60 = arith.muli %58, %59 : vector<1x4x256xi32>
      %c15_i32_11 = arith.constant 15 : i32
      %61 = vector.broadcast %c15_i32_11 : i32 to vector<1x4x256xi32>
      %62 = arith.shrui %60, %61 : vector<1x4x256xi32>
      %63 = arith.xori %60, %62 : vector<1x4x256xi32>
      %c-2073254261_i32_12 = arith.constant -2073254261 : i32
      %64 = vector.broadcast %c-2073254261_i32_12 : i32 to vector<1x4x256xi32>
      %65 = arith.muli %63, %64 : vector<1x4x256xi32>
      %c16_i32_13 = arith.constant 16 : i32
      %66 = vector.broadcast %c16_i32_13 : i32 to vector<1x4x256xi32>
      %67 = arith.shrui %65, %66 : vector<1x4x256xi32>
      %68 = arith.xori %65, %67 : vector<1x4x256xi32>
      %c8_i32_14 = arith.constant 8 : i32
      %69 = vector.broadcast %c8_i32_14 : i32 to vector<1x4x256xi32>
      %70 = arith.shrui %68, %69 : vector<1x4x256xi32>
      %71 = arith.sitofp %70 : vector<1x4x256xi32> to vector<1x4x256xf32>
      %cst_15 = arith.constant 5.96046448E-8 : f32
      %72 = vector.broadcast %cst_15 : f32 to vector<1x4x256xf32>
      %73 = arith.mulf %71, %72 : vector<1x4x256xf32>
      %74 = math.log %48 : vector<1x4x256xf32>
      %cst_16 = arith.constant -2.000000e+00 : f32
      %75 = vector.broadcast %cst_16 : f32 to vector<1x4x256xf32>
      %76 = arith.mulf %75, %74 : vector<1x4x256xf32>
      %77 = math.sqrt %76 : vector<1x4x256xf32>
      %cst_17 = arith.constant 6.28318548 : f32
      %78 = vector.broadcast %cst_17 : f32 to vector<1x4x256xf32>
      %79 = arith.mulf %78, %73 : vector<1x4x256xf32>
      %80 = math.cos %79 : vector<1x4x256xf32>
      %81 = arith.mulf %77, %80 : vector<1x4x256xf32>
      %cst_18 = arith.constant 1.500000e-02 : f32
      %82 = vector.broadcast %cst_18 : f32 to vector<1x4x256xf32>
      %83 = arith.mulf %82, %81 : vector<1x4x256xf32>
      %cst_19 = arith.constant 0.000000e+00 : f32
      %84 = vector.broadcast %cst_19 : f32 to vector<1x4x256xf32>
      %85 = arith.addf %84, %83 : vector<1x4x256xf32>
      %c0 = arith.constant 0 : index
      %c0_20 = arith.constant 0 : index
      %c0_21 = arith.constant 0 : index
      %86 = vector.load %arg5[%c0, %c0_20, %c0_21] : memref<1x4x256xf32, #tpu.memory_space<vmem>>, vector<1x4x256xf32>
      %c0_22 = arith.constant 0 : index
      %c0_23 = arith.constant 0 : index
      %c0_24 = arith.constant 0 : index
      %87 = vector.load %arg6[%c0_22, %c0_23, %c0_24] : memref<1x1x256xf32, #tpu.memory_space<vmem>>, vector<1x1x256xf32>
      %88 = vector.broadcast %87 : vector<1x1x256xf32> to vector<1x4x256xf32>
      %89 = arith.mulf %85, %88 : vector<1x4x256xf32>
      %90 = arith.addf %86, %89 : vector<1x4x256xf32>
      %c0_25 = arith.constant 0 : index
      %c0_26 = arith.constant 0 : index
      %c0_27 = arith.constant 0 : index
      %91 = vector.load %arg7[%c0_25, %c0_26, %c0_27] : memref<1x4x256xf32, #tpu.memory_space<vmem>>, vector<1x4x256xf32>
      tpu.vector_store %arg7[%c0_25, %c0_26, %c0_27], %90 {strides = array<i32>} : memref<1x4x256xf32, #tpu.memory_space<vmem>>, vector<1x4x256xf32>,
    } else {
    }
    return
  }
  func.func @transform_0(%arg0: i32, %arg1: i32, %arg2: i32, %arg3: memref<4xi32, #tpu.memory_space<smem>>, %arg4: memref<4xi32, #tpu.memory_space<smem>>) -> (i32, i32, i32) {
    %c0_i32 = arith.constant 0 : i32
    %c0_i32_0 = arith.constant 0 : i32
    return %arg0, %arg1, %c0_i32 : i32, i32, i32
  }
  func.func @transform_1(%arg0: i32, %arg1: i32, %arg2: i32, %arg3: memref<4xi32, #tpu.memory_space<smem>>, %arg4: memref<4xi32, #tpu.memory_space<smem>>) -> (i32, i32, i32) {
    %c2_i32 = arith.constant 2 : i32
    %0 = arith.muli %arg2, %c2_i32 : i32
    %1 = arith.addi %0, %arg0 : i32
    %c0_i32 = arith.constant 0 : i32
    %c0_i32_0 = arith.constant 0 : i32
    %c0_i32_1 = arith.constant 0 : i32
    return %1, %c0_i32, %c0_i32_0 : i32, i32, i32
  }
  func.func @transform_2(%arg0: i32, %arg1: i32, %arg2: i32, %arg3: memref<4xi32, #tpu.memory_space<smem>>, %arg4: memref<4xi32, #tpu.memory_space<smem>>) -> (i32, i32, i32) {
    %c2_i32 = arith.constant 2 : i32
    %0 = arith.muli %arg2, %c2_i32 : i32
    %1 = arith.addi %0, %arg0 : i32
    %c0_i32 = arith.constant 0 : i32
    %c0_i32_0 = arith.constant 0 : i32
    return %1, %arg1, %c0_i32 : i32, i32, i32
  }
}

</mosaic_0001>

<bundles_post_ra>
// kernel: tpu_custom_call.1
= control target key start
LH: loop header
LB: loop body
LE: loop exit
PB: predicated region body
PF: predicated region fallthrough
CT: control target
= control target key end

     0   :  { %s1434_s0 = inlined_call_operand.hbm [shape: s32[4], index: 0, kind: input, shape index: {}]   ;;  %s1435_s2 = inlined_call_operand.hbm [shape: f32[2,4,256], index: 2, kind: input, shape index: {}]   ;;  %s1436_s3 = inlined_call_operand.vmem [shape: f32[4,1,256], index: 3, kind: input, shape index: {}]   ;;  %s1437_s4 = inlined_call_operand.hbm [shape: f32[4,4,256], index: 4, kind: output, shape index: {}]   ;;  %s1438_s1 = inlined_call_operand.vmem [shape: s32[4], index: 1, kind: input, shape index: {}]  }
   0x1   :  { %s861_s17 = scalar_lea.hbm %s1434_s0, 16 }
   0x2   :  { %p862_p0 = scmp.ne.s32.totalorder %s1434_s0, %s861_s17  ;;  %p865_p1 = scmp.lt.u32.totalorder %s861_s17, %s1434_s0 }
   0x4   :  { %p867_p2 = pnand %p865_p1, %p862_p0 }
   0x6   :  { %870 = shalt.err (!%p867_p2)  }
   0x7   :  { %s1039_s22 = smov [#allocation3]   ;;  %s11_s27 = sshll.u32 %s1438_s1, 4  ;;  %s12_s27 = int_to_ptr.vmem [resolvable:$true] %s11_s27 }
   0x8   :  { %10 = dma.hbm_to_smem %s1434_s0, 16, %s1039_s22, [#allocation2] }
   0x9   :  { %s871_s28 = scalar_lea.vmem %s12_s27, 16  ;;  %p876_p4 = scmp.lt.s32.totalorder %s12_s27, %s12_s27 }
   0xa   :  { %p872_p3 = scmp.ne.s32.totalorder %s12_s27, %s871_s28  ;;  %p877_p5 = scmp.lt.s32.totalorder %s871_s28, %s871_s28 }
   0xc   :  { %p878_p6 = por %p877_p5, %p876_p4 }
   0xe   :  { %p879_p7 = pnand %p878_p6, %p872_p3 }
  0x10   :  { %882 = shalt.err (!%p879_p7)  }
  0x11   :  { %s1040_s29 = smov [#allocation4]  }
  0x12   :  { %14 = dma.vmem_to_smem %s12_s27, 16, %s1040_s29, [#allocation2] }
  0x13   :  { %985 = dma.done.wait [#allocation2], 32 }
  0x14   :  { %986 = vsyncadd [#allocation2], 4294967264 }
  0x15   :  { %16 = sfence }
  0x16   :  { %17 = vsyncpa [#allocation6], 0 }
  0x17   :  { %19 = vsyncpa [#allocation6 + $0x1], 0 }
  0x18   :  { %20 = vsyncpa [#allocation7], 0 }
  0x19   :  { %22 = vsyncpa [#allocation7 + $0x1], 0  ;;  %s1089_s0 = smov 0   ;;  %s1091_s1 = smov 0  }
  0x1a   :  { %s1093_s30 = smov 0   ;;  %s1095_s5 = smov 0  }
  0x1b   :  { %s1097_s6 = smov 0   ;;  %s1099_s7 = smov 0  }
  0x1c   :  { %s1101_s8 = smov 0   ;;  %s1103_s9 = smov 0  }
  0x1d   :  { %s1105_s10 = smov 0   ;;  %s1107_s11 = smov 0  }
  0x1e   :  { %s1109_s12 = smov 0  }
  0x1f LB: > { %s692_s13 = sadd.s32 4294967295, %s1037_s12   ;;  %s693_s14 = sadd.s32 4294967294, %s1037_s12   ;;  %s1037_s12 = sphi %s1109_s12, %s28_s12   ;;  %s1033_s11 = sphi %s1107_s11, %s1464_s11   ;;  %s1029_s10 = sphi %s1105_s10, %s1463_s10   ;;  %s1025_s9 = sphi %s1103_s9, %s1462_s9   ;;  %s1021_s8 = sphi %s1101_s8, %s1461_s8   ;;  %s1017_s7 = sphi %s1099_s7, %s1460_s7   ;;  %s1013_s6 = sphi %s1097_s6, %s1459_s6   ;;  %s1009_s5 = sphi %s1095_s5, %s1458_s5   ;;  %s1005_s30 = sphi %s1093_s30, %s1457_s30   ;;  %s1001_s1 = sphi %s1091_s1, %s1456_s1   ;;  %s997_s0 = sphi %s1089_s0, %s1455_s0  }
  0x20   : > { %s40_s15 = sadd.s32 1, %s1029_s10  ;;  %s47_s16 = sadd.s32 1, %s1033_s11 }
  0x21   : > { %p41_p8 = scmp.ge.s32.totalorder %s40_s15, 2  ;;  %s56_s17 = sadd.s32 1, %s1017_s7 }
  0x22   : > { %p63_p9 = scmp.ne.s32.totalorder %s1017_s7, %s1013_s6  ;;  %p64_p10 = scmp.eq.s32.totalorder %s1037_s12, 0 }
  0x23   : > { %s1466_s15 = smov (%p41_p8, %s40_s15), 0  ;;  %s1468_s16 = smov (!%p41_p8, %s47_s16), %s1033_s11 }
  0x24   : > { %p1153_p11 = por %p64_p10, %p63_p9  ;;  %p69_p12 = scmp.ne.s32.totalorder %s1013_s6, %s1009_s5 }
  0x25   : > { %p49_p13 = scmp.ge.s32.totalorder %s1468_s16, 2  ;;  %p70_p0 = scmp.eq.s32.totalorder %s692_s13, 0 }
  0x26   : > { %s696_s19 = sshll.u32 %s1029_s10, 1  ;;  %s697_s20 = sshll.u32 %s1466_s15, 1 }
  0x27   : > { %s1470_s16 = smov (%p49_p13, %s1468_s16), 0  ;;  %p1162_p1 = por %p70_p0, %p69_p12 }
  0x28   : > { %s110_s22 = sadd.s32 %s1033_s11, %s696_s19  ;;  %s51_s23 = ssub.s32 %s1033_s11, %s1470_s16 }
  0x29   : > { %s112_s24 = sadd.s32 %s697_s20, %s1470_s16  ;;  %p54_p2 = scmp.eq.s32.totalorder %s51_s23, 0 }
  0x2a   : > { %s113_s25 = ssub.s32 %s110_s22, %s112_s24  ;;  %s118_s26 = sadd.s32 1, %s1005_s30 }
  0x2b   : > { %p116_p3 = scmp.eq.s32.totalorder %s113_s25, 0  ;;  %p128_p4 = scmp.ne.s32.totalorder %s1005_s30, %s1001_s1 }
  0x2c   : > { %s1172_s27 = scalar_select %p54_p2, %s1017_s7, %s56_s17  }
  0x2d   : > { %s1175_s28 = scalar_select %p116_p3, %s1005_s30, %s118_s26  }
  0x2e   : > { %p129_p5 = scmp.eq.s32.totalorder %s692_s13, 3  ;;  %p134_p6 = scmp.ne.s32.totalorder %s1001_s1, %s997_s0 }
  0x2f   : > { %p135_p7 = scmp.eq.s32.totalorder %s693_s14, 3  ;;  %p747_p10 = scmp.lt.s32.totalorder %s1037_s12, 4 }
  0x30   : > { %p1183_p8 = por %p129_p5, %p128_p4  ;;  %s155_s17 = sand.u32 1, %s1017_s7  }
  0x31   : > { %p1187_p9 = por %p135_p7, %p134_p6  ;;  %s725_s19 = sshll.u32 %s1033_s11, 7 }
  0x32   : > { %s1442_s29 = scalar_select %p1183_p8, 1, 0 }
  0x33   : > { %s1443_s5 = scalar_select %p1187_p9, 1, 0 }
  0x34   : > { %s700_s20 = sshll.u32 %s155_s17, 3  ;;  %s1197_s24 = scalar_lea.hbm %s1435_s2, %s725_s19 }
  0x35   : > { %s159_s13 = scalar_lea.vmem [#allocation5], %s700_s20  ;;  %p1201_p12 = pnand %p747_p10, %p1153_p11 }
  0x36   : > { %s169_s14 = sshll.u32 %s159_s13, 4  ;;  %s156_s26 = scalar_lea.sflag [#allocation6], %s155_s17  ;;  %s1205_s14 = int_to_ptr.vmem [resolvable:$true] %s169_s14 }
  0x37   : > { %s883_s19 = scalar_lea.hbm %s1197_s24, 128  ;;  %p885_p3 = pneg %p1201_p12 }
  0x38   : > { %p884_p2 = scmp.ne.s32.totalorder %s1197_s24, %s883_s19  ;;  %s888_s22 = scalar_lea.hbm %s1435_s2, 256 }
  0x39   : > { %p889_p11 = scmp.lt.u32.totalorder %s1197_s24, %s1435_s2  ;;  %p890_p6 = scmp.lt.u32.totalorder %s888_s22, %s883_s19 }
  0x3a   : > { %p886_p4 = pnand %p885_p3, %p884_p2  ;;  %p892_p10 = scmp.lt.u32.totalorder %s883_s19, %s1197_s24 }
  0x3b   : > { %p891_p7 = por %p890_p6, %p889_p11 }
  0x3c   : > { %p887_p5 = pneg %p886_p4 }
  0x3d   : > { %p893_p13 = por %p892_p10, %p891_p7 }
  0x3f   : > { %p894_p0 = pnand %p893_p13, %p887_p5 }
  0x41   : > { %897 = shalt.err (!%p894_p0)
}
  0x42   : > { %s898_s17 = scalar_lea.vmem %s1205_s14, 128  ;;  %s1041_s18 = smov [#allocation5]  }
  0x43   : > { %p899_p2 = scmp.ne.s32.totalorder %s1205_s14, %s898_s17  ;;  %s903_s20 = sshll.u32 %s1041_s18, 4  ;;  %s904_s20 = int_to_ptr.vmem [resolvable:$false] %s903_s20 }
  0x44   : > { %s905_s23 = scalar_lea.vmem %s904_s20, 256  ;;  %p906_p8 = scmp.lt.s32.totalorder %s1205_s14, %s904_s20 }
  0x45   : > { %p901_p4 = pnand %p899_p2, %p885_p3  ;;  %p907_p11 = scmp.lt.s32.totalorder %s905_s23, %s898_s17 }
  0x47   : > { %p902_p9 = pneg %p901_p4  ;;  %p908_p6 = por %p907_p11, %p906_p8 }
  0x49   : > { %p909_p7 = pnand %p908_p6, %p902_p9 }
  0x4b   : > { %912 = shalt.err (!%p909_p7)
}
  0x4c   : > { %742 = dma.hbm_to_vmem [thread:$0]  (!%p1201_p12), %s1197_s24, 128, %s1205_s14, %s156_s26  }
  0x4d   : > { %p1445_p13 = scmp.lt.s32.totalorder %s1037_s12, 5  ;;  %p1446_p0 = scmp.ge.s32.totalorder %s1037_s12, 1 }
  0x4f   : > { %p186_p3 = pnand %p1446_p0, %p1445_p13 }
  0x50   : > { %s191_s19 = sand.u32 (!%p186_p3), 1, %s1013_s6  }
  0x51   : > { %189 = sbr.rel (%p186_p3) target bundleno = 277 (0x115), region = 28  ;;  %s1239_s22 = sshll.u32 (!%p186_p3), %s191_s19, 3 }
  0x52   : > { %s192_s13 = scalar_lea.sflag (!%p186_p3), [#allocation6], %s191_s19 }
  0x58   : > { %988 = dma.done.wait (%p1162_p1), %s192_s13, 128  }
  0x59   : > { %990 = vsyncadd (%p1162_p1), %s192_s13, 4294967168  ;;  %s706_s24 = sshll.u32 %s1021_s8, 1  ;;  %s219_s14 = sand.u32 1, %s1001_s1  }
  0x5a   : > { %s1249_s25 = sadd.s32 %s1025_s9, %s706_s24  ;;  %s705_s26 = sshll.u32 %s219_s14, 3 }
  0x5b   : > { %p224_p8 = scmp.lt.s32.totalorder %s1249_s25, 3  ;;  %s234_s18 = sld [smem:[#allocation4 + %s1249_s25]] }
  0x5c   : > { %s1261_s17 = scalar_lea.vmem [#allocation8], %s705_s26 }
  0x5d   : > { %s225_s20 = scalar_select %p224_p8, %s1249_s25, 3 }
  0x5f   : > { %s707_s23 = sshll.u32 %s225_s20, 1 }
  0x60   : > { %s1259_s13 = scalar_lea.vmem %s1436_s3, %s707_s23 }
  0x61   : > { %p709_p1 = scmp.ne.s32.totalorder %s234_s18, 0 }
  0x62   : > { %s1447_s8 = scalar_lea.vmem (!%p709_p1), [#allocation5], %s1239_s22 }
  0x63   : > { %238 = sbr.rel (%p709_p1) target bundleno = 106 (0x6a), region = 36  ;;  %v239_v0 = vld [vmem:[%s1447_s8] sm:$0xff] (!%p709_p1) }
  0x64   : > { %240 = vst [vmem:[%s1261_s17] sm:$0xff] (!%p709_p1), %v239_v0 }
  0x6a PF: > { %s241_s9 = sld [smem:[#allocation4 + %s1249_s25]] }
  0x70   : > { %p710_p9 = scmp.eq.s32.totalorder %s241_s9, 0 }
  0x71   : > { %s246_s24 = sld [smem:[#allocation3 + %s1249_s25]] (!%p710_p9)  ;;  %v247_v1 = vlaneseq (!%p710_p9)  ;;  %s1452_s18 = scalar_lea.vmem (!%p710_p9), [#allocation5], %s1239_s22 }
  0x72   : > { %245 = sbr.rel (%p710_p9) target bundleno = 252 (0xfc), region = 40 }
  0x73   : > { %v1268_v2 = vshrl.u32 (!%p710_p9), %v247_v1, 7  ;;  %v250_v3 = vand.u32 (!%p710_p9), 127, %v247_v1 }
  0x75   : > { %v251_v4 = vadd.s32 (!%p710_p9), 128, %v250_v3  ;;  %v255_v5 = vmul.u32 (!%p710_p9), 256, %v1268_v2 }
  0x77   : > { %v256_v6 = vadd.s32 (!%p710_p9), %v255_v5, %v250_v3  ;;  %v257_v7 = vadd.s32 (!%p710_p9), %v255_v5, %v251_v4  ;;  %s260_s26 = smul.u32 (!%p710_p9), 2654435769, %s246_s24 }
  0x79   : > { %v258_v8 = vmul.u32 2, %v256_v6  ;;  %v259_v9 = vmul.u32 2, %v257_v7  ;;  %v261_v10 = vstv %s260_s26  ;;  %v1042_v6 = vmov 683565275  }
  0x7b   : > { %v288_v11 = vadd.s32 1, %v258_v8  ;;  %v289_v12 = vadd.s32 1, %v259_v9  ;;  %v262_v25 = vadd.s32 %v261_v10, %v258_v8  ;;  %v263_v30 = vadd.s32 %v261_v10, %v259_v9 }
  0x7c   : > { %v1043_v8 = vmov 2475754826  }
  0x7d   : > { %v290_v13 = vadd.s32 %v288_v11, %v261_v10  ;;  %v291_v14 = vadd.s32 %v289_v12, %v261_v10  ;;  %v264_v31 = vshrl.u32 %v262_v25, 16  ;;  %v265_v36 = vshrl.u32 %v263_v30, 16 }
  0x7f   : > { %v292_v15 = vshrl.u32 %v290_v13, 16  ;;  %v293_v16 = vshrl.u32 %v291_v14, 16  ;;  %v266_v37 = vxor.u32 %v264_v31, %v262_v25  ;;  %v267_v42 = vxor.u32 %v265_v36, %v263_v30 }
  0x81   : > { %v294_v17 = vxor.u32 %v292_v15, %v290_v13  ;;  %v295_v18 = vxor.u32 %v293_v16, %v291_v14  ;;  %v268_v43 = vmul.u32 2146121005, %v266_v37  ;;  %v269_v47 = vmul.u32 2146121005, %v267_v42 }
  0x82   : > { %v1044_v16 = vmov 2131351028  }
  0x83   : > { %v296_v19 = vmul.u32 2146121005, %v294_v17  ;;  %v297_v20 = vmul.u32 2146121005, %v295_v18  ;;  %v270_v49 = vshrl.u32 %v268_v43, 15  ;;  %v271_v54 = vshrl.u32 %v269_v47, 15 }
  0x85   : > { %v298_v21 = vshrl.u32 %v296_v19, 15  ;;  %v299_v22 = vshrl.u32 %v297_v20, 15  ;;  %v272_v56 = vxor.u32 %v270_v49, %v268_v43  ;;  %v273_v60 = vxor.u32 %v271_v54, %v269_v47 }
  0x87   : > { %v300_v23 = vxor.u32 %v298_v21, %v296_v19  ;;  %v301_v24 = vxor.u32 %v299_v22, %v297_v20  ;;  %v274_v62 = vmul.u32 2221713035, %v272_v56  ;;  %v275_v4 = vmul.u32 2221713035, %v273_v60 }
  0x88   : > { %v1045_v19 = vmov 2102212464   ;;  %v1046_v22 = vmov 920167782  }
  0x89   : > { %v302_v26 = vmul.u32 2221713035, %v300_v23  ;;  %v303_v27 = vmul.u32 2221713035, %v301_v24  ;;  %v276_v10 = vshrl.u32 %v274_v62, 16 }
  0x8b   : > { %v304_v28 = vshrl.u32 %v302_v26, 16  ;;  %v305_v29 = vshrl.u32 %v303_v27, 16  ;;  %v278_v42 = vxor.u32 %v276_v10, %v274_v62 }
  0x8d   : > { %v306_v32 = vxor.u32 %v304_v28, %v302_v26  ;;  %v307_v33 = vxor.u32 %v305_v29, %v303_v27  ;;  %v1047_v27 = vmov 1326507024  }
  0x8f   : > { %v308_v34 = vshrl.u32 %v306_v32, 8  ;;  %v309_v35 = vshrl.u32 %v307_v33, 8 }
  0x91   : > { %v310_v38 = vcvt.s32.f32 %v308_v34  ;;  %v311_v39 = vcvt.s32.f32 %v309_v35 }
  0x93   : > { %v312_v40 = vmul.f32 5.9604645e-08, %v310_v38  ;;  %v313_v41 = vmul.f32 5.9604645e-08, %v311_v39  ;;  %v277_v38 = vshrl.u32 %v275_v4, 16 }
  0x95   : > { %v1271_v44 = vmul.f32 6.2831855, %v312_v40  ;;  %v1273_v45 = vmul.f32 6.2831855, %v313_v41 }
  0x97   : > { %v339_v46 = vand.u32 2139095040, %v1271_v44  ;;  %v442_v48 = vand.u32 2139095040, %v1273_v45  ;;  %v336_v50 = vand.u32 2147483647, %v1271_v44  ;;  %v439_v12 = vand.u32 2147483647, %v1273_v45 }
  0x98   : > { %vm338_vm13 = vcmp.lt.s32.totalorder %v1271_v44, 0 }
  0x99   : > { %v340_v51 = vshrl.u32 %v339_v46, 23  ;;  %v443_v52 = vshrl.u32 %v442_v48, 23  ;;  %v343_v57 = vand.u32 8388607, %v336_v50  ;;  %v446_v47 = vand.u32 8388607, %v439_v12 }
  0x9a   : > { %vm1333_vm14 = vcmp.le.f32.partialorder %v336_v50, 0.7853982 }
  0x9b   : > { %v711_v53 = vadd.s32 4294967169, %v340_v51  ;;  %v715_v55 = vadd.s32 4294967169, %v443_v52  ;;  %v344_v63 = vor.u32 8388608, %v343_v57  ;;  %v279_v57 = vxor.u32 %v277_v38, %v275_v4 }
  0x9c   : > { %v447_v62 = vor.u32 8388608, %v446_v47 }
  0x9d   : > { %v346_v58 = vadd.s32 1, %v711_v53  ;;  %v449_v59 = vadd.s32 1, %v715_v55  ;;  %v1280_v11 = vshll.u32 %v344_v63, 8 }
  0x9f   : > { %vm347_vm0 = vcmp.gt.s32.totalorder %v346_v58, 0  ;;  %vm450_vm1 = vcmp.gt.s32.totalorder %v449_v59, 0 }
  0xa0   : > { %v348_v61 = vsel %vm347_vm0, %v346_v58, 0  ;;  %v451_v1 = vsel %vm450_vm1, %v449_v59, 0  ;;  %vm441_vm0 = vcmp.lt.s32.totalorder %v1273_v45, 0  ;;  %vm1352_vm1 = vcmp.le.f32.partialorder %v439_v12, 0.7853982 }
  0xa1   : > { %v350_v0 = vand.u32 31, %v348_v61  ;;  %v349_v5 = vshrl.u32 %v348_v61, 5  ;;  %v1283_v13 = vand.u32 31, %v451_v1  ;;  %v452_v63 = vshrl.u32 %v451_v1, 5 }
  0xa3   : > { %v351_v3 = vsub.s32 32, %v350_v0  ;;  %v353_v7 = vshll.u32 %v1042_v6, %v350_v0  ;;  %v356_v9 = vshll.u32 %v1043_v8, %v350_v0  ;;  %v359_v18 = vshll.u32 %v1044_v16, %v350_v0 }
  0xa4   : > { %v362_v21 = vshll.u32 %v1045_v19, %v350_v0  ;;  %v365_v24 = vshll.u32 %v1046_v22, %v350_v0  ;;  %vm368_vm2 = vcmp.lt.s32.totalorder %v349_v5, 1  ;;  %vm369_vm3 = vcmp.lt.s32.totalorder %v349_v5, 2 }
  0xa5   : > { %v352_v14 = vshrl.u32 %v1042_v6, %v351_v3  ;;  %v354_v15 = vshrl.u32 %v1043_v8, %v351_v3  ;;  %v357_v17 = vshrl.u32 %v1044_v16, %v351_v3  ;;  %v360_v20 = vshrl.u32 %v1045_v19, %v351_v3 }
  0xa6   : > { %v363_v23 = vshrl.u32 %v1046_v22, %v351_v3  ;;  %v366_v28 = vshrl.u32 %v1047_v27, %v351_v3  ;;  %vm370_vm4 = vcmp.lt.s32.totalorder %v349_v5, 3  ;;  %vm371_vm5 = vcmp.lt.s32.totalorder %v349_v5, 4 }
  0xa7   : > { %v355_v25 = vor.u32 %v354_v15, %v353_v7  ;;  %v358_v26 = vor.u32 %v357_v17, %v356_v9  ;;  %v361_v29 = vor.u32 %v360_v20, %v359_v18  ;;  %v454_v37 = vsub.s32 32, %v1283_v13 }
  0xa8   : > { %v364_v30 = vor.u32 %v363_v23, %v362_v21  ;;  %v367_v31 = vor.u32 %v366_v28, %v365_v24  ;;  %v456_v55 = vshll.u32 %v1042_v6, %v1283_v13  ;;  %v459_v58 = vshll.u32 %v1043_v8, %v1283_v13 }
  0xa9   : > { %v372_v32 = vsel %vm368_vm2, %v352_v14, %v355_v25  ;;  %v376_v33 = vsel %vm368_vm2, %v355_v25, %v358_v26  ;;  %v373_v34 = vsel %vm371_vm5, %v361_v29, 2102212464  ;;  %v380_v36 = vsel %vm368_vm2, %v358_v26, %v361_v29 }
  0xaa   : > { %v377_v35 = vsel %vm371_vm5, %v364_v30, 920167782  ;;  %v374_v39 = vsel %vm370_vm4, %v358_v26, %v373_v34  ;;  %v381_v41 = vsel %vm371_vm5, %v367_v31, 1326507024  ;;  %v457_v56 = vshrl.u32 %v1043_v8, %v454_v37 }
  0xab   : > { %v378_v40 = vsel %vm370_vm4, %v361_v29, %v377_v35  ;;  %v382_v46 = vsel %vm370_vm4, %v364_v30, %v381_v41  ;;  %v375_v48 = vsel %vm369_vm3, %v372_v32, %v374_v39  ;;  %v460_v59 = vshrl.u32 %v1044_v16, %v454_v37 }
  0xac   : > { %v379_v43 = vsel %vm369_vm3, %v376_v33, %v378_v40  ;;  %v383_v49 = vsel %vm369_vm3, %v380_v36, %v382_v46  ;;  %v462_v60 = vshll.u32 %v1044_v16, %v1283_v13  ;;  %v391_v61 = vmul.u32 %v1280_v11, %v375_v48 }
  0xad   : > { %v1292_v51 = vmul.u32.u64.low %v1280_v11, %v379_v43  ;;  %v1293_v52 = vmul.u32.u64.high %v1280_v11, %v379_v43, %v1292_v51  ;;  %v1297_v53 = vmul.u32.u64.low %v1280_v11, %v383_v49  ;;  %v1298_v54 = vmul.u32.u64.high %v1280_v11, %v383_v49, %v1297_v53 }
  0xae   : > { %v463_v0 = vshrl.u32 %v1045_v19, %v454_v37  ;;  %v280_v3 = vshrl.u32 %v278_v42, 8  ;;  %v455_v7 = vshrl.u32 %v1042_v6, %v454_v37  ;;  %v465_v9 = vshll.u32 %v1045_v19, %v1283_v13 }
  0xaf   : > { %v394_v5 = vadd.s32 1, %v1293_v52  ;;  %vm393_vm6 = vc.u32 %v1298_v54, %v1292_v51  ;;  %v458_v4 = vor.u32 %v457_v56, %v456_v55  ;;  %v461_v10 = vor.u32 %v460_v59, %v459_v58 }
  0xb0   : > { %v464_v8 = vor.u32 %v463_v0, %v462_v60  ;;  %v466_v15 = vshrl.u32 %v1046_v22, %v454_v37  ;;  %v468_v11 = vshll.u32 %v1046_v22, %v1283_v13  ;;  %v469_v16 = vshrl.u32 %v1047_v27, %v454_v37 }
  0xb1   : > { %v395_v14 = vsel %vm393_vm6, %v394_v5, %v1293_v52  ;;  %vm471_vm7 = vcmp.lt.s32.totalorder %v452_v63, 1  ;;  %vm472_vm8 = vcmp.lt.s32.totalorder %v452_v63, 2  ;;  %v487_v17 = vshll.u32 %v447_v62, 8 }
  0xb2   : > { %v396_v1 = vadd.s32 %v395_v14, %v391_v61  ;;  %v467_v18 = vor.u32 %v466_v15, %v465_v9  ;;  %v470_v6 = vor.u32 %v469_v16, %v468_v11  ;;  %vm473_vm9 = vcmp.lt.s32.totalorder %v452_v63, 3 }
  0xb3   : > { %vm474_vm10 = vcmp.lt.s32.totalorder %v452_v63, 4  ;;  %v479_v21 = vsel %vm471_vm7, %v458_v4, %v461_v10  ;;  %v483_v23 = vsel %vm471_vm7, %v461_v10, %v464_v8  ;;  %v282_v24 = vcvt.s32.f32 %v280_v3 }
  0xb4   : > { %v397_v19 = vadd.s32 536870912, %v396_v1  ;;  %v476_v20 = vsel %vm474_vm10, %v464_v8, 2102212464  ;;  %v475_v25 = vsel %vm471_vm7, %v455_v7, %v458_v4  ;;  %v480_v26 = vsel %vm474_vm10, %v467_v18, 920167782 }
  0xb5   : > { %v484_v28 = vsel %vm474_vm10, %v470_v6, 1326507024  ;;  %v477_v13 = vsel %vm473_vm9, %v461_v10, %v476_v20  ;;  %v481_v22 = vsel %vm473_vm9, %v464_v8, %v480_v26  ;;  %v281_v35 = vshrl.u32 %v279_v57, 8 }
  0xb6   : > { %v1310_v29 = vshrl.u32 %v397_v19, 30  ;;  %v485_v27 = vsel %vm473_vm9, %v467_v18, %v484_v28  ;;  %v482_v30 = vsel %vm472_vm8, %v479_v21, %v481_v22  ;;  %v478_v36 = vsel %vm472_vm8, %v475_v25, %v477_v13 }
  0xb7   : > { %v486_v31 = vsel %vm472_vm8, %v483_v23, %v485_v27  ;;  %v1319_v37 = vmul.u32.u64.low %v487_v17, %v482_v30  ;;  %v1320_v38 = vmul.u32.u64.high %v487_v17, %v482_v30, %v1319_v37  ;;  %v284_v39 = vmul.f32 5.9604645e-08, %v282_v24 }
  0xb8   : > { %v399_v32 = vshll.u32 %v1310_v29, 30  ;;  %v1315_v33 = vmul.u32.u64.low %v487_v17, %v486_v31  ;;  %v1316_v34 = vmul.u32.u64.high %v487_v17, %v486_v31, %v1315_v33  ;;  %v494_v42 = vmul.u32 %v487_v17, %v478_v36 }
  0xb9   : > { %v283_v43 = vcvt.s32.f32 %v281_v35  ;;  %v497_v46 = vadd.s32 1, %v1320_v38  ;;  %v286_v47 = vsub.f32 1.0, %v284_v39  ;;  %v392_v58 = vadd.s32 %v1292_v51, %v1298_v54 }
  0xba   : > { %v400_v40 = vsub.s32 %v396_v1, %v399_v32  ;;  %vm496_vm11 = vc.u32 %v1316_v34, %v1319_v37  ;;  %v495_v20 = vadd.s32 %v1319_v37, %v1316_v34  ;;  %v422_v22 = vsub.s32 4, %v1310_v29 }
  0xbb   : > { %v498_v49 = vsel %vm496_vm11, %v497_v46, %v1320_v38  ;;  %v285_v55 = vmul.f32 5.9604645e-08, %v283_v43  ;;  %845 = vlog2.f32 %v286_v47  ;;  %vm428_vm7 = vweird.f32 %v1271_v44 }
  0xbc   : > { %v402_v41 = vsub.s32 0, %v400_v40  ;;  %v499_v53 = vadd.s32 %v498_v49, %v494_v42  ;;  %v423_v34 = vsel %vm338_vm13, %v422_v22, %v1310_v29 }
  0xbd   : > { %v287_v60 = vsub.f32 1.0, %v285_v55  ;;  %v425_v38 = vsel %vm1333_vm14, 0, %v423_v34 }
  0xbe   : > { %v712_v48 = vmin.u32 %v402_v41, %v400_v40  ;;  %v500_v57 = vadd.s32 536870912, %v499_v53  ;;  %v429_v41 = vand.u32 3, %v425_v38 }
  0xbf   : > { %847 = vlog2.f32 %v287_v60 }
  0xc0   : > { %v404_v52 = vclz %v712_v48  ;;  %v1327_v59 = vshrl.u32 %v500_v57, 30  ;;  %vm431_vm2 = vcmp.eq.s32.totalorder %v429_v41, 0  ;;  %vm434_vm3 = vcmp.eq.s32.totalorder %v429_v41, 2 }
  0xc1   : > { %vm430_vm5 = vcmp.lt.s32.totalorder %v429_v41, 2 }
  0xc2   : > { %v713_v56 = vadd.s32 4294967294, %v404_v52  ;;  %v502_v3 = vshll.u32 %v1327_v59, 30  ;;  %v525_v46 = vsub.s32 4, %v1327_v59 }
  0xc4   : > { %vm714_vm12 = vcmp.lt.s32.totalorder %v713_v56, 0  ;;  %v503_v9 = vsub.s32 %v499_v53, %v502_v3 }
  0xc5   : > { %v407_v61 = vsel %vm714_vm12, 0, %v713_v56  ;;  %v846_v14 = vpop.eup %845  ;;  %v526_v56 = vsel %vm441_vm0, %v525_v46, %v1327_v59 }
  0xc6   : > { %v408_v62 = vsub.s32 32, %v407_v61  ;;  %v409_v63 = vshll.u32 %v400_v40, %v407_v61  ;;  %v412_v0 = vsub.s32 4294967266, %v407_v61  ;;  %v505_v8 = vsub.s32 0, %v503_v9 }
  0xc7   : > { %v315_v1 = vmul.f32 0.6931472, %v846_v14  ;;  %v528_v60 = vsel %vm1352_vm1, 0, %v526_v56 }
  0xc8   : > { %v410_v5 = vshrl.u32 %v392_v58, %v408_v62  ;;  %v413_v7 = vadd.s32 127, %v412_v0  ;;  %v716_v54 = vmin.u32 %v505_v8, %v503_v9  ;;  %v532_v3 = vand.u32 3, %v528_v60 }
  0xc9   : > { %v848_v21 = vpop.eup %847  ;;  %v318_v23 = vmul.f32 -2.0, %v315_v1 }
  0xca   : > { %v411_v4 = vor.u32 %v410_v5, %v409_v63  ;;  %v414_v10 = vshll.u32 %v413_v7, 23  ;;  %v507_v16 = vclz %v716_v54  ;;  %v317_v27 = vmul.f32 0.6931472, %v848_v21  ;;  %v549_v54 = vld [vmem:[%s1259_s13] sm:$0x3] }
  0xcb   : > { %vm322_vm4 = vcmp.eq.f32.partialorder %v318_v23, inf  ;;  %v325_v62 = vand.u32 2147483648, %v318_v23  ;;  %vm324_vm6 = vcmp.eq.f32.partialorder %v318_v23, 0.0  ;;  %vm537_vm10 = vcmp.eq.s32.totalorder %v532_v3, 2 }
  0xcc   : > { %v415_v15 = vor.u32 4788187, %v414_v10  ;;  %v418_v51 = vcvt.s32.f32 %v411_v4  ;;  %v717_v18 = vadd.s32 4294967294, %v507_v16  ;;  %v319_v35 = vmul.f32 -2.0, %v317_v27 }
  0xcd   : > { %v553_v10 = vsub.s32 0, %v1268_v2  ;;  %vm534_vm11 = vcmp.eq.s32.totalorder %v532_v3, 0  ;;  %vm533_vm12 = vcmp.lt.s32.totalorder %v532_v3, 2  ;;  %v557_v16 = vsub.s32 1, %v1268_v2 }
  0xce   : > { %v416_v11 = vand.u32 2147483647, %v415_v15  ;;  %vm718_vm15 = vcmp.lt.s32.totalorder %v717_v18, 0  ;;  %vm329_vm8 = vcmp.eq.f32.partialorder %v319_v35, inf  ;;  %vm331_vm9 = vcmp.eq.f32.partialorder %v319_v35, 0.0 }
  0xcf   : > { %v510_v24 = vsel %vm718_vm15, 0, %v717_v18  ;;  %v332_v4 = vand.u32 2147483648, %v319_v35 }
  0xd0   : > { %v419_v17 = vmul.f32 %v418_v51, %v416_v11  ;;  %v511_v26 = vsub.s32 32, %v510_v24  ;;  %v512_v28 = vshll.u32 %v503_v9, %v510_v24  ;;  %v515_v13 = vsub.s32 4294967266, %v510_v24 }
  0xd2   : > { %v420_v19 = vxor.u32 2147483648, %v419_v17  ;;  %v513_v30 = vshrl.u32 %v495_v20, %v511_v26  ;;  %v516_v31 = vadd.s32 127, %v515_v13 }
  0xd4   : > { %v421_v25 = vsel %vm338_vm13, %v420_v19, %v419_v17  ;;  %v514_v32 = vor.u32 %v513_v30, %v512_v28  ;;  %v517_v33 = vshll.u32 %v516_v31, 23  ;;  %vm531_vm13 = vweird.f32 %v1273_v45  ;;  %v548_v28 = vld [vmem:[%s1452_s18] sm:$0xff] }
  0xd5   : > { %v424_v50 = vsel %vm1333_vm14, %v1271_v44, %v421_v25  ;;  %v554_v19 = vrot.slane %v549_v54, %v553_v10 }
  0xd6   : > { %849 = vcosq.f32 %v424_v50  ;;  %v518_v36 = vor.u32 4788187, %v517_v33  ;;  %v521_v37 = vcvt.s32.f32 %v514_v32 }
  0xd7   : > { %851 = vsinq.f32 %v424_v50 }
  0xd8   : > { %853 = vrsqrt.f32 %v318_v23  ;;  %v519_v39 = vand.u32 2147483647, %v518_v36 }
  0xd9   : > { %855 = vrsqrt.f32 %v319_v35 }
  0xda   : > { %v522_v40 = vmul.f32 %v521_v37, %v519_v39 }
  0xdc   : > { %v523_v29 = vxor.u32 2147483648, %v522_v40 }
  0xde   : > { %v524_v53 = vsel %vm441_vm0, %v523_v29, %v522_v40 }
  0xdf   : > { %v527_v55 = vsel %vm1352_vm1, %v1273_v45, %v524_v53 }
  0xe0   : > { %v850_v42 = vpop.eup %849  ;;  %857 = vcosq.f32 %v527_v55 }
  0xe1   : > { %v852_v47 = vpop.eup %851  ;;  %v435_v52 = vxor.u32 2147483648, %v850_v42  ;;  %859 = vsinq.f32 %v527_v55 }
  0xe2   : > { %v854_v48 = vpop.eup %853  ;;  %v432_v49 = vxor.u32 2147483648, %v852_v47 }
  0xe3   : > { %v321_v12 = vmul.f32 %v854_v48, %v318_v23  ;;  %v436_v58 = vsel %vm434_vm3, %v435_v52, %v852_v47  ;;  %v856_v61 = vpop.eup %855 }
  0xe4   : > { %v433_v57 = vsel %vm431_vm2, %v850_v42, %v432_v49  ;;  %v328_v5 = vmul.f32 %v856_v61, %v319_v35 }
  0xe5   : > { %v323_v63 = vsel %vm322_vm4, %v318_v23, %v321_v12  ;;  %v437_v0 = vsel %vm430_vm5, %v433_v57, %v436_v58  ;;  %v558_v23 = vrot.slane %v549_v54, %v557_v16 }
  0xe6   : > { %v326_v59 = vsel %vm324_vm6, %v325_v62, %v323_v63  ;;  %v438_v7 = vsel %vm428_vm7, nan, %v437_v0  ;;  %v330_v14 = vsel %vm329_vm8, %v319_v35, %v328_v5 }
  0xe7   : > { %v542_v51 = vmul.f32 %v438_v7, %v326_v59  ;;  %v333_v1 = vsel %vm331_vm9, %v332_v4, %v330_v14 }
  0xe9   : > { %v544_v6 = vmul.f32 0.015, %v542_v51 }
  0xea   : > { %v858_v9 = vpop.eup %857 }
  0xeb   : > { %v860_v8 = vpop.eup %859  ;;  %v538_v15 = vxor.u32 2147483648, %v858_v9  ;;  %v561_v25 = vmul.f32 %v554_v19, %v544_v6 }
  0xec   : > { %v535_v44 = vxor.u32 2147483648, %v860_v8 }
  0xed   : > { %v539_v11 = vsel %vm537_vm10, %v538_v15, %v860_v8 }
  0xee   : > { %v536_v17 = vsel %vm534_vm11, %v858_v9, %v535_v44 }
  0xef   : > { %v540_v18 = vsel %vm533_vm12, %v536_v17, %v539_v11 }
  0xf0   : > { %v541_v20 = vsel %vm531_vm13, nan, %v540_v18 }
  0xf1   : > { %v543_v21 = vmul.f32 %v541_v20, %v333_v1 }
  0xf3   : > { %v545_v24 = vmul.f32 0.015, %v543_v21 }
  0xf5   : > { %v562_v26 = vmul.f32 %v558_v23, %v545_v24 }
  0xf7   : > { %v565_v13 = vcombine.low %v561_v25, %v562_v26 }
  0xf9   : > { %v567_v22 = vadd.f32 %v565_v13, %v548_v28 }
  0xfb   : > { %568 = vst [vmem:[%s1261_s17] sm:$0xff] %v567_v22 }
  0xfc PF: > { %s726_s20 = sshll.u32 %s1249_s25, 7  ;;  %s588_s13 = sshll.u32 %s1261_s17, 4  ;;  %s589_s13 = int_to_ptr.vmem [resolvable:$true] %s588_s13 }
  0xfd   : > { %s1375_s21 = scalar_lea.hbm %s1437_s4, %s726_s20  ;;  %s570_s8 = scalar_lea.sflag [#allocation7], %s219_s14 }
  0xfe   : > { %s913_s22 = scalar_lea.vmem %s589_s13, 128  ;;  %p1453_p5 = scmp.ne.s32.totalorder %s1442_s29, 0 }
  0xff   : > { %p914_p12 = scmp.ne.s32.totalorder %s589_s13, %s913_s22  ;;  %s1048_s9 = smov [#allocation8]  }
 0x100   : > { %s917_s24 = sshll.u32 %s1048_s9, 4  ;;  %s918_s24 = int_to_ptr.vmem [resolvable:$false] %s917_s24 }
 0x101   : > { %p915_p10 = pnand %p914_p12, %p1453_p5  ;;  %s919_s26 = scalar_lea.vmem %s918_s24, 256 }
 0x102   : > { %p920_p4 = scmp.lt.s32.totalorder %s589_s13, %s918_s24  ;;  %p921_p11 = scmp.lt.s32.totalorder %s919_s26, %s913_s22 }
 0x103   : > { %p916_p2 = pneg %p915_p10 }
 0x104   : > { %p922_p6 = por %p921_p11, %p920_p4 }
 0x106   : > { %p923_p7 = pnand %p922_p6, %p916_p2 }
 0x108   : > { %926 = shalt.err (!%p923_p7)
}
 0x109   : > { %s927_s17 = scalar_lea.hbm %s1375_s21, 128  ;;  %s931_s18 = scalar_lea.hbm %s1437_s4, 512 }
 0x10a   : > { %p928_p13 = scmp.ne.s32.totalorder %s1375_s21, %s927_s17  ;;  %p932_p8 = scmp.lt.u32.totalorder %s1375_s21, %s1437_s4 }
 0x10b   : > { %p933_p1 = scmp.lt.u32.totalorder %s931_s18, %s927_s17  ;;  %p935_p12 = scmp.lt.u32.totalorder %s927_s17, %s1375_s21 }
 0x10c   : > { %p929_p0 = pnand %p928_p13, %p1453_p5 }
 0x10d   : > { %p934_p9 = por %p933_p1, %p932_p8 }
 0x10e   : > { %p930_p3 = pneg %p929_p0 }
 0x10f   : > { %p936_p10 = por %p935_p12, %p934_p9 }
 0x111   : > { %p937_p2 = pnand %p936_p10, %p930_p3 }
 0x113   : > { %940 = shalt.err (!%p937_p2)
}
 0x114   : > { %737 = dma.vmem_to_hbm [thread:$0]  (%p1453_p5), %s589_s13, 128, %s1375_s21, %s570_s8  }
 0x115 PF: > { %p748_p4 = scmp.ge.s32.totalorder %s1037_s12, 2  ;;  %s600_s19 = sand.u32 1, %s997_s0  }
 0x116   : > { %p1454_p11 = scmp.ne.s32.totalorder %s1443_s5, 0  ;;  %s601_s22 = scalar_lea.sflag [#allocation7], %s600_s19 }
 0x118   : > { %p744_p6 = pnand %p748_p4, %p1454_p11 }
 0x11a   : > { %992 = dma.done.wait (!%p744_p6), %s601_s22, 128  }
 0x11b   : > { %994 = vsyncadd (!%p744_p6), %s601_s22, 4294967168  ;;  %s28_s12 = sadd.s32 1, %s1037_s12   ;;  %s1455_s0 = smov %s1001_s1 }
 0x11c   : > { %p25_p7 = scmp.ge.s32.totalorder %s28_s12, 6   ;;  %s1456_s1 = smov %s1005_s30 }
 0x11d   : > { %s1457_s30 = smov %s1175_s28  ;;  %s1458_s5 = smov %s1013_s6 }
 0x11e   : > { %s1459_s6 = smov %s1017_s7  ;;  %s1460_s7 = smov %s1172_s27 }
 0x11f   : > { %s1461_s8 = smov %s1029_s10  ;;  %s1462_s9 = smov %s1033_s11 }
 0x120   : > { %s1463_s10 = smov %s1466_s15  ;;  %s1464_s11 = smov %s1470_s16 }
 0x121   :  { %27 = sbr.rel (!%p25_p7) target bundleno = 31 (0x1f), region = 84 }
 0x128   :  { %606 = vsyncpa [#allocation6], 1 }
 0x129   :  { %608 = vsyncpa [#allocation6 + $0x1], 1 }
 0x12a   :  { %609 = vsyncpa [#allocation7], 1 }
 0x12b   :  { %611 = vsyncpa [#allocation7 + $0x1], 1 }

</bundles_post_ra>
